<compile_context>
chip_gen: v5e
topology: v5e:2x2
jax: 0.10.0
libtpu: 0.0.40
codegen_flags: <defaults>
</compile_context>

<pallas_src>
import functools

import jax
import jax.numpy as jnp
from jax.experimental import pallas as pl
from jax.experimental.pallas import tpu as pltpu


def _round_up(x, m):
    return (x + m - 1) // m * m


# --------------------- fused conv / FC matmul kernels ------------------------

def _fused_matmul_k1_kernel(a_ref, b_ref, s_ref, c_ref, *rest, relu, has_res):
    """Single-K-block path: out = relu?(scale*(A@B)+bias [+residual])."""
    if has_res:
        r_ref, o_ref = rest
    else:
        (o_ref,) = rest
    y = jnp.dot(a_ref[...], b_ref[...], preferred_element_type=jnp.float32)
    y = y * s_ref[...] + c_ref[...]                        # BN (folded), f32
    if has_res:
        y = y + r_ref[...].astype(jnp.float32)             # residual add
    if relu:
        y = jnp.maximum(y, 0.0)
    o_ref[...] = y.astype(o_ref.dtype)


def _fused_matmul_acc_kernel(a_ref, b_ref, s_ref, c_ref, *rest, relu, has_res):
    """K-tiled fallback: f32 VMEM accumulator, epilogue on the last K tile."""
    if has_res:
        r_ref, o_ref, acc_ref = rest
    else:
        o_ref, acc_ref = rest

    @pl.when(pl.program_id(2) == 0)
    def _():
        acc_ref[...] = jnp.zeros_like(acc_ref)

    acc_ref[...] += jnp.dot(a_ref[...], b_ref[...],
                            preferred_element_type=jnp.float32)

    @pl.when(pl.program_id(2) == pl.num_programs(2) - 1)
    def _():
        y = acc_ref[...] * s_ref[...] + c_ref[...]
        if has_res:
            y = y + r_ref[...].astype(jnp.float32)
        if relu:
            y = jnp.maximum(y, 0.0)
        o_ref[...] = y.astype(o_ref.dtype)


def fused_matmul(a, b, scale, bias, residual=None, relu=False,
                 out_dtype=jnp.bfloat16):
    """a: (M, K) bf16; b: (Kp, N) bf16 with K zero-padded to Kp (mult of 128);
    scale/bias: (1, N) f32; residual: optional (M, N).

    Returns relu?(scale * (a @ b) + bias [+ residual]) as (M, N) out_dtype.
    """
    M, K = a.shape
    Kp, N = b.shape
    assert Kp >= K and Kp % 128 == 0

    # N tiling: full (possibly <128) block for small N, else 128/256-lane tiles.
    if N <= 128:
        Np, tn = N, N
    else:
        Np = _round_up(N, 128)
        tn = 256 if Np % 256 == 0 else 128
    # M tiling: pad only to a sublane multiple when small; 128/256-row tiles
    # otherwise so multiple "parallel" tiles exist for megacore sharding.
    if M <= 256:
        Mp = _round_up(M, 8)
        tm = Mp
    else:
        Mp = _round_up(M, 128)
        tm = 256 if Mp % 256 == 0 else 128
    # K tiling: keep the whole contraction as one block while the bf16 weight
    # tile stays under ~3 MiB (true for every resnet18 layer here) -> no k
    # grid axis, no accumulator; otherwise 128-multiple K tiles + accumulator.
    single_k = Kp * tn * 2 <= 3 * 1024 * 1024
    tk = Kp if single_k else next(t for t in (512, 384, 256, 128) if Kp % t == 0)

    a = a.astype(jnp.bfloat16)
    if Mp != M or Kp != K:
        a = jnp.pad(a, ((0, Mp - M), (0, Kp - K)))
    if Np != N:
        b = jnp.pad(b, ((0, 0), (0, Np - N)))
        scale = jnp.pad(scale, ((0, 0), (0, Np - N)))
        bias = jnp.pad(bias, ((0, 0), (0, Np - N)))

    has_res = residual is not None
    if has_res:
        r = residual.astype(jnp.bfloat16)
        if Mp != M or Np != N:
            r = jnp.pad(r, ((0, Mp - M), (0, Np - N)))

    if single_k:
        in_specs = [
            pl.BlockSpec((tm, Kp), lambda i, j: (i, 0)),
            pl.BlockSpec((Kp, tn), lambda i, j: (0, j)),
            pl.BlockSpec((1, tn), lambda i, j: (0, j)),
            pl.BlockSpec((1, tn), lambda i, j: (0, j)),
        ]
        args = [a, b, scale, bias]
        if has_res:
            in_specs.append(pl.BlockSpec((tm, tn), lambda i, j: (i, j)))
            args.append(r)
        kernel = functools.partial(_fused_matmul_k1_kernel,
                                   relu=relu, has_res=has_res)
        out = pl.pallas_call(
            kernel,
            out_shape=jax.ShapeDtypeStruct((Mp, Np), out_dtype),
            grid=(Mp // tm, Np // tn),
            in_specs=in_specs,
            out_specs=pl.BlockSpec((tm, tn), lambda i, j: (i, j)),
            compiler_params=pltpu.CompilerParams(
                dimension_semantics=("parallel", "parallel")),
        )(*args)
    else:
        in_specs = [
            pl.BlockSpec((tm, tk), lambda i, j, k: (i, k)),
            pl.BlockSpec((tk, tn), lambda i, j, k: (k, j)),
            pl.BlockSpec((1, tn), lambda i, j, k: (0, j)),
            pl.BlockSpec((1, tn), lambda i, j, k: (0, j)),
        ]
        args = [a, b, scale, bias]
        if has_res:
            in_specs.append(pl.BlockSpec((tm, tn), lambda i, j, k: (i, j)))
            args.append(r)
        kernel = functools.partial(_fused_matmul_acc_kernel,
                                   relu=relu, has_res=has_res)
        out = pl.pallas_call(
            kernel,
            out_shape=jax.ShapeDtypeStruct((Mp, Np), out_dtype),
            grid=(Mp // tm, Np // tn, Kp // tk),
            in_specs=in_specs,
            out_specs=pl.BlockSpec((tm, tn), lambda i, j, k: (i, j)),
            scratch_shapes=[pltpu.VMEM((tm, tn), jnp.float32)],
            compiler_params=pltpu.CompilerParams(
                dimension_semantics=("parallel", "parallel", "arbitrary")),
        )(*args)

    if Mp != M or Np != N:
        out = out[:M, :N]
    return out


# ------------------------------ pooling kernels ------------------------------

def _max_taps_kernel(x_ref, o_ref):
    o_ref[...] = jnp.max(x_ref[...], axis=0)


def _max_over_taps(taps):
    """taps: (T, M, C) -> (M, C) max over pooling-window taps (tiled over M)."""
    T, M, C = taps.shape
    if M <= 512:
        Mp = _round_up(M, 8)
        tm = Mp
    else:
        Mp = _round_up(M, 512)
        tm = 512
    if Mp != M:
        taps = jnp.pad(taps, ((0, 0), (0, Mp - M), (0, 0)))
    out = pl.pallas_call(
        _max_taps_kernel,
        out_shape=jax.ShapeDtypeStruct((Mp, C), taps.dtype),
        grid=(Mp // tm,),
        in_specs=[pl.BlockSpec((T, tm, C), lambda i: (0, i, 0))],
        out_specs=pl.BlockSpec((tm, C), lambda i: (i, 0)),
        compiler_params=pltpu.CompilerParams(
            dimension_semantics=("parallel",)),
    )(taps)
    return out[:M] if Mp != M else out


def maxpool_3x3_s2(x):
    """MaxPool2d(kernel_size=3, stride=2, padding=1) on NHWC."""
    N, H, W, C = x.shape
    xp = jnp.pad(x, ((0, 0), (1, 1), (1, 1), (0, 0)),
                 constant_values=float("-inf"))
    Ho = (H + 2 - 3) // 2 + 1
    Wo = (W + 2 - 3) // 2 + 1
    taps = []
    for i in range(3):
        for j in range(3):
            taps.append(xp[:, i:i + 2 * (Ho - 1) + 1:2,
                           j:j + 2 * (Wo - 1) + 1:2, :])
    t = jnp.stack(taps, axis=0).reshape(9, N * Ho * Wo, C)
    y = _max_over_taps(t)
    return y.reshape(N, Ho, Wo, C)


def _avgpool_fc_kernel(x_ref, w_ref, b_ref, o_ref):
    # Global spatial mean (f32) + final Linear(512, num_classes) + bias, fused.
    feat = jnp.mean(x_ref[...].astype(jnp.float32), axis=1)        # (N, C)
    logits = jnp.dot(feat.astype(jnp.bfloat16), w_ref[...],
                     preferred_element_type=jnp.float32)           # (N, nc)
    o_ref[...] = logits + b_ref[...]


def avgpool_fc(x, w, b):
    """x: (N, H, W, C) bf16; w: (C, nc) bf16; b: (1, nc) f32 -> (N, nc) f32."""
    N, H, W, C = x.shape
    nc = w.shape[1]
    xr = x.reshape(N, H * W, C)
    return pl.pallas_call(
        _avgpool_fc_kernel,
        out_shape=jax.ShapeDtypeStruct((N, nc), jnp.float32),
    )(xr, w, b)


# ---------------------------------- glue -------------------------------------

def _extract_patches(x, kh, kw, stride, pad):
    """x: (N, H, W, C) NHWC -> im2col patches (N, Ho, Wo, kh*kw, C)."""
    if pad:
        x = jnp.pad(x, ((0, 0), (pad, pad), (pad, pad), (0, 0)))
    _, H, W, _ = x.shape
    Ho = (H - kh) // stride + 1
    Wo = (W - kw) // stride + 1
    taps = []
    for i in range(kh):
        for j in range(kw):
            taps.append(x[:, i:i + stride * (Ho - 1) + 1:stride,
                          j:j + stride * (Wo - 1) + 1:stride, :])
    return jnp.stack(taps, axis=3), Ho, Wo


def conv_bn(x, cp, stride, pad, relu, residual=None):
    """Conv2d(bias=False) + BatchNorm2d(eval) [+ residual] [+ ReLU], fused."""
    kh, kw, cin, cout = cp['kh'], cp['kw'], cp['cin'], cp['cout']
    N = x.shape[0]
    if kh == 1 and kw == 1:
        xs = x if stride == 1 else x[:, ::stride, ::stride, :]
        Ho, Wo = xs.shape[1], xs.shape[2]
        a = xs.reshape(N * Ho * Wo, cin)
    else:
        patches, Ho, Wo = _extract_patches(x, kh, kw, stride, pad)
        a = patches.reshape(N * Ho * Wo, kh * kw * cin)
    y = fused_matmul(a, cp['w'], cp['scale'], cp['bias'],
                     residual=residual, relu=relu, out_dtype=jnp.bfloat16)
    return y.reshape(N, Ho, Wo, cout)


def basic_block(x, p):
    stride = p['stride']
    h = conv_bn(x, p['conv1'], stride=stride, pad=1, relu=True)
    if 'down' in p:
        identity = conv_bn(x, p['down'], stride=stride, pad=0, relu=False)
    else:
        identity = x
    n, ho, wo, c = identity.shape
    res = identity.reshape(n * ho * wo, c)
    # conv2 + bn2 + residual add + ReLU, all in one fused matmul epilogue.
    return conv_bn(h, p['conv2'], stride=1, pad=1, relu=True, residual=res)


def resnet_forward(params, x_nchw):
    """Equivalent of ResnetTorchVisionClass.forward (resnet18 backbone, eval)."""
    x = jnp.transpose(x_nchw, (0, 2, 3, 1)).astype(jnp.bfloat16)  # NCHW -> NHWC
    # stem: 7x7/2 conv + BN + ReLU (fused) + 3x3/2 maxpool
    x = conv_bn(x, params['conv1'], stride=2, pad=3, relu=True)
    x = maxpool_3x3_s2(x)
    # layer1..layer4, 2 BasicBlocks each
    for layer in params['layers']:
        for blk in layer:
            x = basic_block(x, blk)
    # adaptive avgpool to 1x1 + fc, fused into a single Pallas kernel
    logits = avgpool_fc(x, params['fc_w'], params['fc_b'])        # (N, nc) f32
    return logits


# ----------------------------- parameter init --------------------------------

def make_params(key, num_classes):
    counter = [0]

    def nk():
        counter[0] += 1
        return jax.random.fold_in(key, counter[0])

    def conv_weight(cout, cin, kh, kw):
        fan_in = cin * kh * kw
        w = (jax.random.normal(nk(), (cout, cin, kh, kw), jnp.float32)
             * jnp.sqrt(2.0 / fan_in))
        # Pre-transform once: (Cout,Cin,kh,kw) -> (kh*kw*Cin, Cout), pad K to
        # a multiple of 128, store in bf16 (MXU-native).
        K = kh * kw * cin
        Kp = _round_up(K, 128)
        wm = jnp.transpose(w, (2, 3, 1, 0)).reshape(K, cout)
        wm = jnp.pad(wm, ((0, Kp - K), (0, 0))).astype(jnp.bfloat16)
        return wm

    def bn(c, eps=1e-5):
        gamma = 1.0 + 0.1 * jax.random.normal(nk(), (c,), jnp.float32)
        beta = 0.1 * jax.random.normal(nk(), (c,), jnp.float32)
        mean = 0.1 * jax.random.normal(nk(), (c,), jnp.float32)
        var = 1.0 + 0.1 * jnp.abs(jax.random.normal(nk(), (c,), jnp.float32))
        scale = gamma / jnp.sqrt(var + eps)
        bias = beta - mean * scale
        return scale.reshape(1, c), bias.reshape(1, c)

    def conv_bn_param(cout, cin, kh, kw):
        w = conv_weight(cout, cin, kh, kw)
        s, b = bn(cout)
        return {'w': w, 'scale': s, 'bias': b,
                'kh': kh, 'kw': kw, 'cin': cin, 'cout': cout}

    def block(cin, cout, stride):
        p = {'conv1': conv_bn_param(cout, cin, 3, 3),
             'conv2': conv_bn_param(cout, cout, 3, 3),
             'stride': stride}
        if stride != 1 or cin != cout:
            p['down'] = conv_bn_param(cout, cin, 1, 1)
        return p

    params = {'conv1': conv_bn_param(64, 3, 7, 7)}
    layers = []
    cin = 64
    for cout, stride in [(64, 1), (128, 2), (256, 2), (512, 2)]:
        layers.append([block(cin, cout, stride), block(cout, cout, 1)])
        cin = cout
    params['layers'] = layers
    # replaced head: resnet.fc = nn.Linear(512, num_classes), stored as (512,nc)
    fc_w = 0.05 * jax.random.normal(nk(), (num_classes, 512), jnp.float32)
    params['fc_w'] = fc_w.T.astype(jnp.bfloat16)
    params['fc_b'] = (0.05 * jax.random.normal(nk(), (num_classes,),
                                               jnp.float32)).reshape(1, -1)
    return params


# ---------------------------------- main --------------------------------------

if __name__ == "__main__":
    config = {'classifier_resnet_type': '18', 'pretrained': False,
              'num_classes_classification': 10}

    root = jax.random.PRNGKey(0)
    k_x, k_p = jax.random.split(root)

    # small input consistent with the module: NCHW, 3 channels, 32x32 spatial
    x = jax.random.normal(k_x, (2, 3, 32, 32), jnp.float32)
    params = make_params(k_p, config['num_classes_classification'])

    logits = resnet_forward(params, x)
    logits = jax.block_until_ready(logits)

    assert logits.shape == (2, config['num_classes_classification'])
    assert bool(jnp.all(jnp.isfinite(logits)))
    print("KERNEL_OK")
</pallas_src>

<mosaic_0001>
module attributes {stable_mosaic.version = 11 : i64} {
  func.func @_fused_matmul_k1_kernel(%arg0: i32, %arg1: i32, %arg2: memref<256x256xbf16, #tpu.memory_space<vmem>>, %arg3: memref<256x64xbf16, #tpu.memory_space<vmem>>, %arg4: memref<1x64xf32, #tpu.memory_space<vmem>>, %arg5: memref<1x64xf32, #tpu.memory_space<vmem>>, %arg6: memref<256x64xbf16, #tpu.memory_space<vmem>>) attributes {dimension_semantics = [#tpu.dimension_semantics<parallel>, #tpu.dimension_semantics<parallel>], iteration_bounds = array<i64: 2, 1>, scalar_prefetch = 0 : i64, scratch_operands = 0 : i64, tpu.core_type = #tpu.core_type<tc>, window_params = [{transform_indices = @transform_0, window_bounds = array<i64: 256, 256>}, {transform_indices = @transform_1, window_bounds = array<i64: 256, 64>}, {transform_indices = @transform_2, window_bounds = array<i64: 1, 64>}, {transform_indices = @transform_3, window_bounds = array<i64: 1, 64>}, {transform_indices = @transform_4, window_bounds = array<i64: 256, 64>}]} {
    %c0 = arith.constant 0 : index
    %c0_0 = arith.constant 0 : index
    %0 = vector.load %arg2[%c0, %c0_0] : memref<256x256xbf16, #tpu.memory_space<vmem>>, vector<256x256xbf16>
    %c0_1 = arith.constant 0 : index
    %c0_2 = arith.constant 0 : index
    %1 = vector.load %arg3[%c0_1, %c0_2] : memref<256x64xbf16, #tpu.memory_space<vmem>>, vector<256x64xbf16>
    %cst = arith.constant dense<0.000000e+00> : vector<256x64xf32>
    %2 = tpu.matmul %0, %1, %cst {dimension_numbers = #tpu.dot_dimension_numbers<[1], [0], [0], [1], [0, 0, 1, 1], [], []>} : vector<256x256xbf16>, vector<256x64xbf16>, vector<256x64xf32> -> vector<256x64xf32>
    %c0_3 = arith.constant 0 : index
    %c0_4 = arith.constant 0 : index
    %3 = vector.load %arg4[%c0_3, %c0_4] : memref<1x64xf32, #tpu.memory_space<vmem>>, vector<1x64xf32>
    %4 = vector.broadcast %3 : vector<1x64xf32> to vector<256x64xf32>
    %5 = arith.mulf %2, %4 : vector<256x64xf32>
    %c0_5 = arith.constant 0 : index
    %c0_6 = arith.constant 0 : index
    %6 = vector.load %arg5[%c0_5, %c0_6] : memref<1x64xf32, #tpu.memory_space<vmem>>, vector<1x64xf32>
    %7 = vector.broadcast %6 : vector<1x64xf32> to vector<256x64xf32>
    %8 = arith.addf %5, %7 : vector<256x64xf32>
    %cst_7 = arith.constant 0.000000e+00 : f32
    %9 = vector.broadcast %cst_7 : f32 to vector<256x64xf32>
    %10 = arith.maximumf %8, %9 : vector<256x64xf32>
    %11 = arith.truncf %10 : vector<256x64xf32> to vector<256x64xbf16>
    %c0_8 = arith.constant 0 : index
    %c0_9 = arith.constant 0 : index
    %12 = vector.load %arg6[%c0_8, %c0_9] : memref<256x64xbf16, #tpu.memory_space<vmem>>, vector<256x64xbf16>
    tpu.vector_store %arg6[%c0_8, %c0_9], %11 {strides = array<i32>} : memref<256x64xbf16, #tpu.memory_space<vmem>>, vector<256x64xbf16>,
    return
  }
  func.func @transform_0(%arg0: i32, %arg1: i32) -> (i32, i32) {
    %c0_i32 = arith.constant 0 : i32
    %c0_i32_0 = arith.constant 0 : i32
    return %arg0, %c0_i32 : i32, i32
  }
  func.func @transform_1(%arg0: i32, %arg1: i32) -> (i32, i32) {
    %c0_i32 = arith.constant 0 : i32
    %c0_i32_0 = arith.constant 0 : i32
    return %c0_i32, %arg1 : i32, i32
  }
  func.func @transform_2(%arg0: i32, %arg1: i32) -> (i32, i32) {
    %c0_i32 = arith.constant 0 : i32
    %c0_i32_0 = arith.constant 0 : i32
    return %c0_i32, %arg1 : i32, i32
  }
  func.func @transform_3(%arg0: i32, %arg1: i32) -> (i32, i32) {
    %c0_i32 = arith.constant 0 : i32
    %c0_i32_0 = arith.constant 0 : i32
    return %c0_i32, %arg1 : i32, i32
  }
  func.func @transform_4(%arg0: i32, %arg1: i32) -> (i32, i32) {
    %c0_i32 = arith.constant 0 : i32
    return %arg0, %arg1 : i32, i32
  }
}

</mosaic_0001>

<bundles_post_ra>
// kernel: tpu_custom_call.1
= control target key start
LH: loop header
LB: loop body
LE: loop exit
PB: predicated region body
PF: predicated region fallthrough
CT: control target
= control target key end

     0   :  { %9 = vsyncpa [#allocation3], 0  ;;  %s1864_s0 = inlined_call_operand.hbm [shape: bf16[512,256], index: 0, kind: input, shape index: {}]   ;;  %s1865_s1 = inlined_call_operand.vmem [shape: bf16[256,64], index: 1, kind: input, shape index: {}]   ;;  %s1866_s2 = inlined_call_operand.vmem [shape: f32[1,64], index: 2, kind: input, shape index: {}]   ;;  %s1867_s3 = inlined_call_operand.vmem [shape: f32[1,64], index: 3, kind: input, shape index: {}]   ;;  %s1868_s4 = inlined_call_operand.vmem [shape: bf16[512,64], index: 4, kind: output, shape index: {}]  }
   0x1   :  { %11 = vsyncpa [#allocation3 + $0x1], 0  ;;  %s1523_s15 = smov 0   ;;  %s1525_s16 = smov 0  }
   0x2   :  { %s1527_s17 = smov 0   ;;  %s1529_s18 = smov 0  }
   0x3   :  { %s1531_s19 = smov 0   ;;  %s1533_s20 = smov 0  }
   0x4 LB: > { %s1080_s21 = sadd.s32 4294967295, %s1494_s20   ;;  %s29_s22 = sadd.s32 1, %s1490_s19  ;;  %s1494_s20 = sphi %s1533_s20, %s17_s20   ;;  %s1490_s19 = sphi %s1531_s19, %s1875_s19   ;;  %s1486_s18 = sphi %s1529_s18, %s1874_s18   ;;  %s1482_s17 = sphi %s1527_s17, %s1873_s17   ;;  %s1478_s16 = sphi %s1525_s16, %s1872_s16   ;;  %s1474_s15 = sphi %s1523_s15, %s1871_s15  }
   0x5   : > { %p31_p0 = scmp.ge.s32.totalorder %s29_s22, 2  ;;  %s36_s23 = sadd.s32 1, %s1482_s17 }
   0x6   : > { %p43_p1 = scmp.ne.s32.totalorder %s1482_s17, %s1478_s16  ;;  %p44_p2 = scmp.eq.s32.totalorder %s1494_s20, 0 }
   0x7   : > { %s1877_s22 = smov (%p31_p0, %s29_s22), 0  ;;  %p49_p4 = scmp.ne.s32.totalorder %s1478_s16, %s1474_s15 }
   0x8   : > { %p1559_p3 = por %p44_p2, %p43_p1  ;;  %s33_s25 = ssub.s32 %s1490_s19, %s1877_s22 }
   0x9   : > { %p50_p5 = scmp.eq.s32.totalorder %s1080_s21, 0  ;;  %p34_p6 = scmp.eq.s32.totalorder %s33_s25, 0 }
   0xa   : > { %p1361_p8 = scmp.lt.s32.totalorder %s1494_s20, 2  ;;  %s198_s28 = sand.u32 1, %s1482_s17  }
   0xb   : > { %p1566_p7 = por %p50_p5, %p49_p4  ;;  %s1290_s29 = sshll.u32 %s1490_s19, 8 }
   0xc   : > { %s1572_s27 = scalar_select %p34_p6, %s1482_s17, %s36_s23  }
   0xd   : > { %s1087_s30 = sshll.u32 %s198_s28, 8  ;;  %s208_s7 = scalar_lea.hbm %s1864_s0, %s1290_s29 }
   0xe   : > { %s209_s8 = sshll.u32 %s208_s7, 4  ;;  %s202_s9 = scalar_lea.vmem [#allocation2], %s1087_s30  ;;  %s210_s8 = int_to_ptr.hbm [resolvable:$true] %s209_s8 }
   0xf   : > { %s211_s10 = sshll.u32 %s202_s9, 4  ;;  %p1358_p9 = pnand %p1361_p8, %p1559_p3  ;;  %s212_s10 = int_to_ptr.vmem [resolvable:$true] %s211_s10 }
  0x10   : > { %p1091_p10 = scmp.ge.s32.totalorder %s1494_s20, 1  ;;  %p219_p11 = scmp.lt.s32.totalorder %s1494_s20, 3 }
  0x11   : > { %s199_s11 = scalar_lea.sflag [#allocation3], %s198_s28  ;;  %s1496_s12 = smov 128  }
  0x12   : > { %s1497_s13 = smov 8   ;;  %p220_p12 = pnand %p1091_p10, %p219_p11 }
  0x13   : > { %1360 = dma.hbm_to_vmem [thread:$0]  (!%p1358_p9), %s210_s8, 4096, %s212_s10, %s199_s11, %s1496_s12, %s1496_s12, %s1497_s13  }
  0x14   : > { %223 = sbr.rel (%p220_p12) target bundleno = 322 (0x142), region = 36  ;;  %s225_s14 = sand.u32 (!%p220_p12), 1, %s1478_s16  }
  0x15   : > { %s1092_s15 = sshll.u32 (!%p220_p12), %s225_s14, 8  ;;  %s226_s21 = scalar_lea.sflag (!%p220_p12), [#allocation3], %s225_s14 }
  0x16   : > { %s1584_s23 = scalar_lea.vmem (!%p220_p12), [#allocation2], %s1092_s15 }
  0x19   : > { %1469 = dma.done.wait (%p1566_p7), %s226_s21, 4096  }
  0x1a   : > { %1471 = vsyncadd (%p1566_p7), %s226_s21, 4294963200  ;;  %v1330_v0 = vld [vmem:[%s1865_s1 + $0x38] sm:$0xff]  ;;  %v1329_v2 = vld [vmem:[%s1865_s1 + $0x30] sm:$0xff]  ;;  %s1093_s13 = sshll.u32 %s1486_s18, 5  ;;  %vm922_vm0 = vcmask 519168  }
  0x1b   : > { %v1338_v1 = vld [vmem:[%s1865_s1 + $0x78] sm:$0xff]  ;;  %608 = vmatpush.bf16.msra.mxu0 %v1330_v0  ;;  %1339 = vmatpush.bf16.msra.mxu2 %v1330_v0  ;;  %v1337_v3 = vld [vmem:[%s1865_s1 + $0x70] sm:$0xff]  ;;  %v1328_v4 = vld [vmem:[%s1865_s1 + $0x28] sm:$0xff]  ;;  %p280_p13 = scmp.lt.s32.totalorder %s1093_s13, 63 }
  0x1c   : > { %697 = vmatpush.bf16.msra.mxu1 %v1338_v1  ;;  %1347 = vmatpush.bf16.msra.mxu3 %v1338_v1  ;;  %v1336_v5 = vld [vmem:[%s1865_s1 + $0x68] sm:$0xff]  ;;  %v1327_v6 = vld [vmem:[%s1865_s1 + $0x20] sm:$0xff]  ;;  %v1326_v8 = vld [vmem:[%s1865_s1 + $0x18] sm:$0xff] }
  0x1d   : > { %v1335_v7 = vld [vmem:[%s1865_s1 + $0x60] sm:$0xff]  ;;  %v1334_v9 = vld [vmem:[%s1865_s1 + $0x58] sm:$0xff]  ;;  %v1325_v10 = vld [vmem:[%s1865_s1 + $0x10] sm:$0xff]  ;;  %s1879_s13 = smov (!%p280_p13, %s1093_s13), 63 }
  0x1e   : > { %v1333_v11 = vld [vmem:[%s1865_s1 + $0x50] sm:$0xff]  ;;  %v1324_v12 = vld [vmem:[%s1865_s1 + $0x8] sm:$0xff]  ;;  %v1323_v14 = vld [vmem:[%s1865_s1] sm:$0xff]  ;;  %s1094_s24 = sshll.u32 %s1879_s13, 2 }
  0x1f   : > { %609 = vmatpush.bf16.msra.mxu0 %v1329_v2  ;;  %1340 = vmatpush.bf16.msra.mxu2 %v1329_v2  ;;  %v1332_v13 = vld [vmem:[%s1865_s1 + $0x48] sm:$0xff]  ;;  %v1331_v15 = vld [vmem:[%s1865_s1 + $0x40] sm:$0xff]  ;;  %v1105_v28 = vld [vmem:[%s1584_s23 + $0x10] sm:$0xf]  ;;  %s1718_s28 = scalar_lea.vmem %s1868_s4, %s1094_s24 }
  0x20   : > { %698 = vmatpush.bf16.msra.mxu1 %v1337_v3  ;;  %1348 = vmatpush.bf16.msra.mxu3 %v1337_v3  ;;  %v1097_v16 = vld [vmem:[%s1584_s23] sm:$0xf]  ;;  %v1292_v17 = vld [vmem:[%s1584_s23 + $0x4] sm:$0xf0]  ;;  %v1291_v20 = vld [vmem:[%s1584_s23 + $0x4] sm:$0xf] }
  0x21   : > { %v1161_v18 = vld [vmem:[%s1584_s23 + $0x80] sm:$0xf]  ;;  %v1308_v19 = vld [vmem:[%s1584_s23 + $0x84] sm:$0xf0]  ;;  %v1099_v21 = vld [vmem:[%s1584_s23 + $0x8] sm:$0xf0]  ;;  %v1098_v24 = vor.u32 %v1292_v17, %v1097_v16 }
  0x22   : > { %v1307_v22 = vld [vmem:[%s1584_s23 + $0x84] sm:$0xf]  ;;  %v1163_v23 = vld [vmem:[%s1584_s23 + $0x88] sm:$0xf0]  ;;  %v1162_v25 = vor.u32 %v1308_v19, %v1161_v18  ;;  %v1102_v26 = vor.u32 %v1291_v20, %v1099_v21  ;;  %v1294_v29 = vld [vmem:[%s1584_s23 + $0x14] sm:$0xf0] }
  0x23   : > { %610 = vmatpush.bf16.msra.mxu0 %v1328_v4  ;;  %1341 = vmatpush.bf16.msra.mxu2 %v1328_v4  ;;  %v1166_v27 = vor.u32 %v1307_v22, %v1163_v23  ;;  %v1169_v30 = vld [vmem:[%s1584_s23 + $0x90] sm:$0xf]  ;;  %v1310_v31 = vld [vmem:[%s1584_s23 + $0x94] sm:$0xf0]  ;;  %v1293_v32 = vld [vmem:[%s1584_s23 + $0x14] sm:$0xf]  ;;  %v1106_v36 = vor.u32 %v1294_v29, %v1105_v28 }
  0x24   : > { %699 = vmatpush.bf16.msra.mxu1 %v1336_v5  ;;  %1349 = vmatpush.bf16.msra.mxu3 %v1336_v5  ;;  %v1107_v33 = vld [vmem:[%s1584_s23 + $0x18] sm:$0xf0]  ;;  %v1309_v34 = vld [vmem:[%s1584_s23 + $0x94] sm:$0xf]  ;;  %v1170_v37 = vor.u32 %v1310_v31, %v1169_v30  ;;  %v1113_v40 = vld [vmem:[%s1584_s23 + $0x20] sm:$0xf] }
  0x25   : > { %v1171_v35 = vld [vmem:[%s1584_s23 + $0x98] sm:$0xf0]  ;;  %v1110_v38 = vor.u32 %v1293_v32, %v1107_v33  ;;  %v1296_v41 = vld [vmem:[%s1584_s23 + $0x24] sm:$0xf0]  ;;  %v1177_v42 = vld [vmem:[%s1584_s23 + $0xa0] sm:$0xf] }
  0x26   : > { %v1174_v39 = vor.u32 %v1309_v34, %v1171_v35  ;;  %v1312_v43 = vld [vmem:[%s1584_s23 + $0xa4] sm:$0xf0]  ;;  %v1295_v44 = vld [vmem:[%s1584_s23 + $0x24] sm:$0xf]  ;;  %v1115_v45 = vld [vmem:[%s1584_s23 + $0x28] sm:$0xf0]  ;;  %v1114_v48 = vor.u32 %v1296_v41, %v1113_v40 }
  0x27   : > { %611 = vmatpush.bf16.msra.mxu0 %v1327_v6  ;;  %1342 = vmatpush.bf16.msra.mxu2 %v1327_v6  ;;  %v1311_v46 = vld [vmem:[%s1584_s23 + $0xa4] sm:$0xf]  ;;  %v1179_v47 = vld [vmem:[%s1584_s23 + $0xa8] sm:$0xf0]  ;;  %v1178_v49 = vor.u32 %v1312_v43, %v1177_v42  ;;  %v1118_v50 = vor.u32 %v1295_v44, %v1115_v45  ;;  %v1121_v52 = vld [vmem:[%s1584_s23 + $0x30] sm:$0xf] }
  0x28   : > { %700 = vmatpush.bf16.msra.mxu1 %v1335_v7  ;;  %1350 = vmatpush.bf16.msra.mxu3 %v1335_v7  ;;  %v1182_v51 = vor.u32 %v1311_v46, %v1179_v47  ;;  %v1298_v53 = vld [vmem:[%s1584_s23 + $0x34] sm:$0xf0]  ;;  %v1185_v54 = vld [vmem:[%s1584_s23 + $0xb0] sm:$0xf]  ;;  %v1297_v56 = vld [vmem:[%s1584_s23 + $0x34] sm:$0xf] }
  0x29   : > { %v1314_v55 = vld [vmem:[%s1584_s23 + $0xb4] sm:$0xf0]  ;;  %v1123_v57 = vld [vmem:[%s1584_s23 + $0x38] sm:$0xf0]  ;;  %v1313_v58 = vld [vmem:[%s1584_s23 + $0xb4] sm:$0xf]  ;;  %v1122_v60 = vor.u32 %v1298_v53, %v1121_v52 }
  0x2a   : > { %v1187_v59 = vld [vmem:[%s1584_s23 + $0xb8] sm:$0xf0]  ;;  %v1186_v61 = vor.u32 %v1314_v55, %v1185_v54  ;;  %v1126_v62 = vor.u32 %v1297_v56, %v1123_v57  ;;  %v1129_v0 = vld [vmem:[%s1584_s23 + $0x40] sm:$0xf]  ;;  %v1300_v1 = vld [vmem:[%s1584_s23 + $0x44] sm:$0xf0] }
  0x2b   : > { %612 = vmatpush.bf16.msra.mxu0 %v1326_v8  ;;  %1343 = vmatpush.bf16.msra.mxu2 %v1326_v8  ;;  %v1190_v63 = vor.u32 %v1313_v58, %v1187_v59  ;;  %v1193_v2 = vld [vmem:[%s1584_s23 + $0xc0] sm:$0xf]  ;;  %v1316_v3 = vld [vmem:[%s1584_s23 + $0xc4] sm:$0xf0]  ;;  %v1299_v4 = vld [vmem:[%s1584_s23 + $0x44] sm:$0xf]  ;;  %v1130_v8 = vor.u32 %v1300_v1, %v1129_v0 }
  0x2c   : > { %701 = vmatpush.bf16.msra.mxu1 %v1334_v9  ;;  %1351 = vmatpush.bf16.msra.mxu3 %v1334_v9  ;;  %v1131_v5 = vld [vmem:[%s1584_s23 + $0x48] sm:$0xf0]  ;;  %v1315_v6 = vld [vmem:[%s1584_s23 + $0xc4] sm:$0xf]  ;;  %v1194_v9 = vor.u32 %v1316_v3, %v1193_v2  ;;  %v1301_v16 = vld [vmem:[%s1584_s23 + $0x54] sm:$0xf] }
  0x2d   : > { %v1195_v7 = vld [vmem:[%s1584_s23 + $0xc8] sm:$0xf0]  ;;  %v1139_v17 = vld [vmem:[%s1584_s23 + $0x58] sm:$0xf0]  ;;  %v1317_v18 = vld [vmem:[%s1584_s23 + $0xd4] sm:$0xf] }
  0x2e   : > { %v1203_v19 = vld [vmem:[%s1584_s23 + $0xd8] sm:$0xf0]  ;;  %v1142_v22 = vor.u32 %v1301_v16, %v1139_v17  ;;  %v1303_v28 = vld [vmem:[%s1584_s23 + $0x64] sm:$0xf]  ;;  %v1147_v29 = vld [vmem:[%s1584_s23 + $0x68] sm:$0xf0] }
  0x2f   : > { %613 = vmatpush.bf16.msra.mxu0 %v1325_v10  ;;  %1344 = vmatpush.bf16.msra.mxu2 %v1325_v10  ;;  %v1134_v10 = vor.u32 %v1299_v4, %v1131_v5  ;;  %v1206_v23 = vor.u32 %v1317_v18, %v1203_v19  ;;  %v1319_v30 = vld [vmem:[%s1584_s23 + $0xe4] sm:$0xf]  ;;  %v1211_v31 = vld [vmem:[%s1584_s23 + $0xe8] sm:$0xf0]  ;;  %v1150_v34 = vor.u32 %v1303_v28, %v1147_v29  ;;  %v1305_v40 = vld [vmem:[%s1584_s23 + $0x74] sm:$0xf] }
  0x30   : > { %702 = vmatpush.bf16.msra.mxu1 %v1333_v11  ;;  %1352 = vmatpush.bf16.msra.mxu3 %v1333_v11  ;;  %v1198_v11 = vor.u32 %v1315_v6, %v1195_v7  ;;  %v1214_v35 = vor.u32 %v1319_v30, %v1211_v31  ;;  %v1155_v41 = vld [vmem:[%s1584_s23 + $0x78] sm:$0xf0]  ;;  %v1321_v42 = vld [vmem:[%s1584_s23 + $0xf4] sm:$0xf]  ;;  %v1711_v52 = vld [vmem:[%s1867_s3] ss:$0 sm:$0xff] }
  0x31   : > { %v1219_v43 = vld [vmem:[%s1584_s23 + $0xf8] sm:$0xf0]  ;;  %v1158_v46 = vor.u32 %v1305_v40, %v1155_v41 }
  0x32   : > { %v1222_v47 = vor.u32 %v1321_v42, %v1219_v43 }
  0x33   : > { %614 = vmatpush.bf16.msra.mxu0 %v1324_v12  ;;  %1345 = vmatpush.bf16.msra.mxu2 %v1324_v12  ;;  %v1137_v12 = vld [vmem:[%s1584_s23 + $0x50] sm:$0xf] }
  0x34   : > { %703 = vmatpush.bf16.msra.mxu1 %v1332_v13  ;;  %1353 = vmatpush.bf16.msra.mxu3 %v1332_v13  ;;  %v1302_v13 = vld [vmem:[%s1584_s23 + $0x54] sm:$0xf0] }
  0x35   : > { %v1138_v20 = vor.u32 %v1302_v13, %v1137_v12 }
  0x37   : > { %615 = vmatpush.bf16.msra.mxu0 %v1323_v14  ;;  %1346 = vmatpush.bf16.msra.mxu2 %v1323_v14  ;;  %v1201_v14 = vld [vmem:[%s1584_s23 + $0xd0] sm:$0xf] }
  0x38   : > { %704 = vmatpush.bf16.msra.mxu1 %v1331_v15  ;;  %1354 = vmatpush.bf16.msra.mxu3 %v1331_v15  ;;  %v1318_v15 = vld [vmem:[%s1584_s23 + $0xd4] sm:$0xf0] }
  0x39   : > { %v1202_v21 = vor.u32 %v1318_v15, %v1201_v14 }
  0x3a   : > { %616 = vmatmul.bf16.vlgmr.msra.gmra.mxu0 %v1098_v24  ;;  %656 = vmatmul.bf16.vlgmr.msra.gmra.mxu2 %v1162_v25  ;;  %v1145_v24 = vld [vmem:[%s1584_s23 + $0x60] sm:$0xf]  ;;  %v1304_v25 = vld [vmem:[%s1584_s23 + $0x64] sm:$0xf0] }
  0x3b   : > { %705 = vmatmul.bf16.vlgmr.msra.gmra.mxu1 %v1102_v26  ;;  %745 = vmatmul.bf16.vlgmr.msra.gmra.mxu3 %v1166_v27  ;;  %v1209_v26 = vld [vmem:[%s1584_s23 + $0xe0] sm:$0xf]  ;;  %v1320_v27 = vld [vmem:[%s1584_s23 + $0xe4] sm:$0xf0]  ;;  %v1146_v32 = vor.u32 %v1304_v25, %v1145_v24 }
  0x3c   : > { %v1210_v33 = vor.u32 %v1320_v27, %v1209_v26 }
  0x4a   : > { %621 = vmatmul.bf16.gmra.mxu0 %v1106_v36  ;;  %661 = vmatmul.bf16.gmra.mxu2 %v1170_v37  ;;  %v1153_v36 = vld [vmem:[%s1584_s23 + $0x70] sm:$0xf]  ;;  %v1306_v37 = vld [vmem:[%s1584_s23 + $0x74] sm:$0xf0] }
  0x4b   : > { %710 = vmatmul.bf16.gmra.mxu1 %v1110_v38  ;;  %750 = vmatmul.bf16.gmra.mxu3 %v1174_v39  ;;  %v1217_v38 = vld [vmem:[%s1584_s23 + $0xf0] sm:$0xf]  ;;  %v1322_v39 = vld [vmem:[%s1584_s23 + $0xf4] sm:$0xf0]  ;;  %v1154_v44 = vor.u32 %v1306_v37, %v1153_v36 }
  0x4c   : > { %v1218_v45 = vor.u32 %v1322_v39, %v1217_v38 }
  0x5a   : > { %626 = vmatmul.bf16.gmra.mxu0 %v1114_v48  ;;  %666 = vmatmul.bf16.gmra.mxu2 %v1178_v49  ;;  %v1706_v49 = vld [vmem:[%s1866_s2] ss:$0 sm:$0xff] }
  0x5b   : > { %715 = vmatmul.bf16.gmra.mxu1 %v1118_v50  ;;  %755 = vmatmul.bf16.gmra.mxu3 %v1182_v51 }
  0x6a   : > { %631 = vmatmul.bf16.gmra.mxu0 %v1122_v60  ;;  %671 = vmatmul.bf16.gmra.mxu2 %v1186_v61 }
  0x6b   : > { %720 = vmatmul.bf16.gmra.mxu1 %v1126_v62  ;;  %760 = vmatmul.bf16.gmra.mxu3 %v1190_v63 }
  0x7a   : > { %636 = vmatmul.bf16.gmra.mxu0 %v1130_v8  ;;  %676 = vmatmul.bf16.gmra.mxu2 %v1194_v9 }
  0x7b   : > { %725 = vmatmul.bf16.gmra.mxu1 %v1134_v10  ;;  %765 = vmatmul.bf16.gmra.mxu3 %v1198_v11 }
  0x8a   : > { %641 = vmatmul.bf16.gmra.mxu0 %v1138_v20  ;;  %681 = vmatmul.bf16.gmra.mxu2 %v1202_v21 }
  0x8b   : > { %730 = vmatmul.bf16.gmra.mxu1 %v1142_v22  ;;  %770 = vmatmul.bf16.gmra.mxu3 %v1206_v23 }
  0x9a   : > { %646 = vmatmul.bf16.gmra.mxu0 %v1146_v32  ;;  %686 = vmatmul.bf16.gmra.mxu2 %v1210_v33 }
  0x9b   : > { %735 = vmatmul.bf16.gmra.mxu1 %v1150_v34  ;;  %775 = vmatmul.bf16.gmra.mxu3 %v1214_v35 }
  0xaa   : > { %651 = vmatmul.bf16.gmra.mxu0 %v1154_v44  ;;  %691 = vmatmul.bf16.gmra.mxu2 %v1218_v45 }
  0xab   : > { %740 = vmatmul.bf16.gmra.mxu1 %v1158_v46  ;;  %780 = vmatmul.bf16.gmra.mxu3 %v1222_v47 }
  0xb7   : > { %v617_v48 = vpop.f32.mrf.mxu0 }
  0xb8   : > { %v706_v50 = vpop.f32.mrf.mxu1 }
  0xb9   : > { %v707_v51 = vadd.f32 %v706_v50, %v617_v48 }
  0xbb   : > { %v790_v53 = vmul.f32 %v1706_v49, %v707_v51 }
  0xbd   : > { %v826_v54 = vadd.f32 %v1711_v52, %v790_v53  ;;  %v657_v55 = vpop.f32.mrf.mxu2 }
  0xbe   : > { %v746_v56 = vpop.f32.mrf.mxu3 }
  0xbf   : > { %v858_v57 = vmax.f32 %v826_v54, 0.0  ;;  %v747_v58 = vadd.f32 %v746_v56, %v657_v55  ;;  %v619_v59 = vpop.f32.mrf.mxu0 }
  0xc0   : > { %v708_v60 = vpop.f32.mrf.mxu1 }
  0xc1   : > { %v890_v61 = vpack.c.bf16 %v858_v57, %v858_v57  ;;  %v806_v62 = vmul.f32 %v1706_v49, %v747_v58  ;;  %v709_v63 = vadd.f32 %v708_v60, %v619_v59 }
  0xc3   : > { %923 = vst.msk [vmem:[%s1718_s28] sm:$0xf] %vm922_vm0, %v890_v61  ;;  %v842_v0 = vadd.f32 %v1711_v52, %v806_v62  ;;  %v791_v1 = vmul.f32 %v1706_v49, %v709_v63 }
  0xc5   : > { %v874_v2 = vmax.f32 %v842_v0, 0.0  ;;  %v827_v3 = vadd.f32 %v1711_v52, %v791_v1  ;;  %v659_v4 = vpop.f32.mrf.mxu2 }
  0xc6   : > { %v748_v5 = vpop.f32.mrf.mxu3 }
  0xc7   : > { %v906_v6 = vpack.c.bf16 %v874_v2, %v874_v2  ;;  %v859_v7 = vmax.f32 %v827_v3, 0.0  ;;  %v749_v8 = vadd.f32 %v748_v5, %v659_v4  ;;  %v622_v9 = vpop.f32.mrf.mxu0 }
  0xc8   : > { %v711_v10 = vpop.f32.mrf.mxu1 }
  0xc9   : > { %939 = vst.msk [vmem:[%s1718_s28 + $0x40] sm:$0xf] %vm922_vm0, %v906_v6  ;;  %v891_v11 = vpack.c.bf16 %v859_v7, %v859_v7  ;;  %v807_v12 = vmul.f32 %v1706_v49, %v749_v8  ;;  %v712_v13 = vadd.f32 %v711_v10, %v622_v9 }
  0xcb   : > { %924 = vst.msk [vmem:[%s1718_s28 + $0x4] sm:$0xf] %vm922_vm0, %v891_v11  ;;  %v843_v14 = vadd.f32 %v1711_v52, %v807_v12  ;;  %v792_v15 = vmul.f32 %v1706_v49, %v712_v13 }
  0xcd   : > { %v875_v16 = vmax.f32 %v843_v14, 0.0  ;;  %v828_v17 = vadd.f32 %v1711_v52, %v792_v15  ;;  %v662_v18 = vpop.f32.mrf.mxu2 }
  0xce   : > { %v751_v19 = vpop.f32.mrf.mxu3 }
  0xcf   : > { %v907_v20 = vpack.c.bf16 %v875_v16, %v875_v16  ;;  %v860_v21 = vmax.f32 %v828_v17, 0.0  ;;  %v752_v22 = vadd.f32 %v751_v19, %v662_v18  ;;  %v624_v23 = vpop.f32.mrf.mxu0 }
  0xd0   : > { %v713_v24 = vpop.f32.mrf.mxu1 }
  0xd1   : > { %940 = vst.msk [vmem:[%s1718_s28 + $0x44] sm:$0xf] %vm922_vm0, %v907_v20  ;;  %v892_v25 = vpack.c.bf16 %v860_v21, %v860_v21  ;;  %v808_v26 = vmul.f32 %v1706_v49, %v752_v22  ;;  %v714_v27 = vadd.f32 %v713_v24, %v624_v23 }
  0xd3   : > { %925 = vst.msk [vmem:[%s1718_s28 + $0x8] sm:$0xf] %vm922_vm0, %v892_v25  ;;  %v844_v28 = vadd.f32 %v1711_v52, %v808_v26  ;;  %v793_v29 = vmul.f32 %v1706_v49, %v714_v27 }
  0xd5   : > { %v876_v30 = vmax.f32 %v844_v28, 0.0  ;;  %v829_v31 = vadd.f32 %v1711_v52, %v793_v29  ;;  %v664_v32 = vpop.f32.mrf.mxu2 }
  0xd6   : > { %v753_v33 = vpop.f32.mrf.mxu3 }
  0xd7   : > { %v908_v34 = vpack.c.bf16 %v876_v30, %v876_v30  ;;  %v861_v35 = vmax.f32 %v829_v31, 0.0  ;;  %v754_v36 = vadd.f32 %v753_v33, %v664_v32  ;;  %v627_v37 = vpop.f32.mrf.mxu0 }
  0xd8   : > { %v716_v38 = vpop.f32.mrf.mxu1 }
  0xd9   : > { %941 = vst.msk [vmem:[%s1718_s28 + $0x48] sm:$0xf] %vm922_vm0, %v908_v34  ;;  %v893_v39 = vpack.c.bf16 %v861_v35, %v861_v35  ;;  %v809_v40 = vmul.f32 %v1706_v49, %v754_v36  ;;  %v717_v41 = vadd.f32 %v716_v38, %v627_v37 }
  0xdb   : > { %926 = vst.msk [vmem:[%s1718_s28 + $0xc] sm:$0xf] %vm922_vm0, %v893_v39  ;;  %v845_v42 = vadd.f32 %v1711_v52, %v809_v40  ;;  %v794_v43 = vmul.f32 %v1706_v49, %v717_v41 }
  0xdd   : > { %v877_v44 = vmax.f32 %v845_v42, 0.0  ;;  %v830_v45 = vadd.f32 %v1711_v52, %v794_v43  ;;  %v667_v46 = vpop.f32.mrf.mxu2 }
  0xde   : > { %v756_v47 = vpop.f32.mrf.mxu3 }
  0xdf   : > { %v909_v48 = vpack.c.bf16 %v877_v44, %v877_v44  ;;  %v862_v50 = vmax.f32 %v830_v45, 0.0  ;;  %v757_v51 = vadd.f32 %v756_v47, %v667_v46  ;;  %v629_v53 = vpop.f32.mrf.mxu0 }
  0xe0   : > { %v718_v54 = vpop.f32.mrf.mxu1 }
  0xe1   : > { %942 = vst.msk [vmem:[%s1718_s28 + $0x4c] sm:$0xf] %vm922_vm0, %v909_v48  ;;  %v894_v55 = vpack.c.bf16 %v862_v50, %v862_v50  ;;  %v810_v56 = vmul.f32 %v1706_v49, %v757_v51  ;;  %v719_v57 = vadd.f32 %v718_v54, %v629_v53 }
  0xe3   : > { %927 = vst.msk [vmem:[%s1718_s28 + $0x10] sm:$0xf] %vm922_vm0, %v894_v55  ;;  %v846_v58 = vadd.f32 %v1711_v52, %v810_v56  ;;  %v795_v59 = vmul.f32 %v1706_v49, %v719_v57 }
  0xe5   : > { %v878_v60 = vmax.f32 %v846_v58, 0.0  ;;  %v831_v61 = vadd.f32 %v1711_v52, %v795_v59  ;;  %v669_v62 = vpop.f32.mrf.mxu2 }
  0xe6   : > { %v758_v63 = vpop.f32.mrf.mxu3 }
  0xe7   : > { %v910_v0 = vpack.c.bf16 %v878_v60, %v878_v60  ;;  %v863_v1 = vmax.f32 %v831_v61, 0.0  ;;  %v759_v2 = vadd.f32 %v758_v63, %v669_v62  ;;  %v632_v3 = vpop.f32.mrf.mxu0 }
  0xe8   : > { %v721_v4 = vpop.f32.mrf.mxu1 }
  0xe9   : > { %943 = vst.msk [vmem:[%s1718_s28 + $0x50] sm:$0xf] %vm922_vm0, %v910_v0  ;;  %v895_v5 = vpack.c.bf16 %v863_v1, %v863_v1  ;;  %v811_v6 = vmul.f32 %v1706_v49, %v759_v2  ;;  %v722_v7 = vadd.f32 %v721_v4, %v632_v3 }
  0xeb   : > { %928 = vst.msk [vmem:[%s1718_s28 + $0x14] sm:$0xf] %vm922_vm0, %v895_v5  ;;  %v847_v8 = vadd.f32 %v1711_v52, %v811_v6  ;;  %v796_v9 = vmul.f32 %v1706_v49, %v722_v7 }
  0xed   : > { %v879_v10 = vmax.f32 %v847_v8, 0.0  ;;  %v832_v11 = vadd.f32 %v1711_v52, %v796_v9  ;;  %v672_v12 = vpop.f32.mrf.mxu2 }
  0xee   : > { %v761_v13 = vpop.f32.mrf.mxu3 }
  0xef   : > { %v911_v14 = vpack.c.bf16 %v879_v10, %v879_v10  ;;  %v864_v15 = vmax.f32 %v832_v11, 0.0  ;;  %v762_v16 = vadd.f32 %v761_v13, %v672_v12  ;;  %v634_v17 = vpop.f32.mrf.mxu0 }
  0xf0   : > { %v723_v18 = vpop.f32.mrf.mxu1 }
  0xf1   : > { %944 = vst.msk [vmem:[%s1718_s28 + $0x54] sm:$0xf] %vm922_vm0, %v911_v14  ;;  %v896_v19 = vpack.c.bf16 %v864_v15, %v864_v15  ;;  %v812_v20 = vmul.f32 %v1706_v49, %v762_v16  ;;  %v724_v21 = vadd.f32 %v723_v18, %v634_v17 }
  0xf3   : > { %929 = vst.msk [vmem:[%s1718_s28 + $0x18] sm:$0xf] %vm922_vm0, %v896_v19  ;;  %v848_v22 = vadd.f32 %v1711_v52, %v812_v20  ;;  %v797_v23 = vmul.f32 %v1706_v49, %v724_v21 }
  0xf5   : > { %v880_v24 = vmax.f32 %v848_v22, 0.0  ;;  %v833_v25 = vadd.f32 %v1711_v52, %v797_v23  ;;  %v674_v26 = vpop.f32.mrf.mxu2 }
  0xf6   : > { %v763_v27 = vpop.f32.mrf.mxu3 }
  0xf7   : > { %v912_v28 = vpack.c.bf16 %v880_v24, %v880_v24  ;;  %v865_v29 = vmax.f32 %v833_v25, 0.0  ;;  %v764_v30 = vadd.f32 %v763_v27, %v674_v26  ;;  %v637_v31 = vpop.f32.mrf.mxu0 }
  0xf8   : > { %v726_v32 = vpop.f32.mrf.mxu1 }
  0xf9   : > { %945 = vst.msk [vmem:[%s1718_s28 + $0x58] sm:$0xf] %vm922_vm0, %v912_v28  ;;  %v897_v33 = vpack.c.bf16 %v865_v29, %v865_v29  ;;  %v813_v34 = vmul.f32 %v1706_v49, %v764_v30  ;;  %v727_v35 = vadd.f32 %v726_v32, %v637_v31 }
  0xfb   : > { %930 = vst.msk [vmem:[%s1718_s28 + $0x1c] sm:$0xf] %vm922_vm0, %v897_v33  ;;  %v849_v36 = vadd.f32 %v1711_v52, %v813_v34  ;;  %v798_v37 = vmul.f32 %v1706_v49, %v727_v35 }
  0xfd   : > { %v881_v38 = vmax.f32 %v849_v36, 0.0  ;;  %v834_v39 = vadd.f32 %v1711_v52, %v798_v37  ;;  %v677_v40 = vpop.f32.mrf.mxu2 }
  0xfe   : > { %v766_v41 = vpop.f32.mrf.mxu3 }
  0xff   : > { %v913_v42 = vpack.c.bf16 %v881_v38, %v881_v38  ;;  %v866_v43 = vmax.f32 %v834_v39, 0.0  ;;  %v767_v44 = vadd.f32 %v766_v41, %v677_v40  ;;  %v639_v45 = vpop.f32.mrf.mxu0 }
 0x100   : > { %v728_v46 = vpop.f32.mrf.mxu1 }
 0x101   : > { %946 = vst.msk [vmem:[%s1718_s28 + $0x5c] sm:$0xf] %vm922_vm0, %v913_v42  ;;  %v898_v47 = vpack.c.bf16 %v866_v43, %v866_v43  ;;  %v814_v48 = vmul.f32 %v1706_v49, %v767_v44  ;;  %v729_v50 = vadd.f32 %v728_v46, %v639_v45 }
 0x103   : > { %931 = vst.msk [vmem:[%s1718_s28 + $0x20] sm:$0xf] %vm922_vm0, %v898_v47  ;;  %v850_v51 = vadd.f32 %v1711_v52, %v814_v48  ;;  %v799_v53 = vmul.f32 %v1706_v49, %v729_v50 }
 0x105   : > { %v882_v54 = vmax.f32 %v850_v51, 0.0  ;;  %v835_v55 = vadd.f32 %v1711_v52, %v799_v53  ;;  %v679_v56 = vpop.f32.mrf.mxu2 }
 0x106   : > { %v768_v57 = vpop.f32.mrf.mxu3 }
 0x107   : > { %v914_v58 = vpack.c.bf16 %v882_v54, %v882_v54  ;;  %v867_v59 = vmax.f32 %v835_v55, 0.0  ;;  %v769_v60 = vadd.f32 %v768_v57, %v679_v56  ;;  %v642_v61 = vpop.f32.mrf.mxu0 }
 0x108   : > { %v731_v62 = vpop.f32.mrf.mxu1 }
 0x109   : > { %947 = vst.msk [vmem:[%s1718_s28 + $0x60] sm:$0xf] %vm922_vm0, %v914_v58  ;;  %v899_v63 = vpack.c.bf16 %v867_v59, %v867_v59  ;;  %v815_v0 = vmul.f32 %v1706_v49, %v769_v60  ;;  %v732_v1 = vadd.f32 %v731_v62, %v642_v61 }
 0x10b   : > { %932 = vst.msk [vmem:[%s1718_s28 + $0x24] sm:$0xf] %vm922_vm0, %v899_v63  ;;  %v851_v2 = vadd.f32 %v1711_v52, %v815_v0  ;;  %v800_v3 = vmul.f32 %v1706_v49, %v732_v1 }
 0x10d   : > { %v883_v4 = vmax.f32 %v851_v2, 0.0  ;;  %v836_v5 = vadd.f32 %v1711_v52, %v800_v3  ;;  %v682_v6 = vpop.f32.mrf.mxu2 }
 0x10e   : > { %v771_v7 = vpop.f32.mrf.mxu3 }
 0x10f   : > { %v915_v8 = vpack.c.bf16 %v883_v4, %v883_v4  ;;  %v868_v9 = vmax.f32 %v836_v5, 0.0  ;;  %v772_v10 = vadd.f32 %v771_v7, %v682_v6  ;;  %v644_v11 = vpop.f32.mrf.mxu0 }
 0x110   : > { %v733_v12 = vpop.f32.mrf.mxu1 }
 0x111   : > { %948 = vst.msk [vmem:[%s1718_s28 + $0x64] sm:$0xf] %vm922_vm0, %v915_v8  ;;  %v900_v13 = vpack.c.bf16 %v868_v9, %v868_v9  ;;  %v816_v14 = vmul.f32 %v1706_v49, %v772_v10  ;;  %v734_v15 = vadd.f32 %v733_v12, %v644_v11 }
 0x113   : > { %933 = vst.msk [vmem:[%s1718_s28 + $0x28] sm:$0xf] %vm922_vm0, %v900_v13  ;;  %v852_v16 = vadd.f32 %v1711_v52, %v816_v14  ;;  %v801_v17 = vmul.f32 %v1706_v49, %v734_v15 }
 0x115   : > { %v884_v18 = vmax.f32 %v852_v16, 0.0  ;;  %v837_v19 = vadd.f32 %v1711_v52, %v801_v17  ;;  %v684_v20 = vpop.f32.mrf.mxu2 }
 0x116   : > { %v773_v21 = vpop.f32.mrf.mxu3 }
 0x117   : > { %v916_v22 = vpack.c.bf16 %v884_v18, %v884_v18  ;;  %v869_v23 = vmax.f32 %v837_v19, 0.0  ;;  %v774_v24 = vadd.f32 %v773_v21, %v684_v20  ;;  %v647_v25 = vpop.f32.mrf.mxu0 }
 0x118   : > { %v736_v26 = vpop.f32.mrf.mxu1 }
 0x119   : > { %949 = vst.msk [vmem:[%s1718_s28 + $0x68] sm:$0xf] %vm922_vm0, %v916_v22  ;;  %v901_v27 = vpack.c.bf16 %v869_v23, %v869_v23  ;;  %v817_v28 = vmul.f32 %v1706_v49, %v774_v24  ;;  %v737_v29 = vadd.f32 %v736_v26, %v647_v25 }
 0x11b   : > { %934 = vst.msk [vmem:[%s1718_s28 + $0x2c] sm:$0xf] %vm922_vm0, %v901_v27  ;;  %v853_v30 = vadd.f32 %v1711_v52, %v817_v28  ;;  %v802_v31 = vmul.f32 %v1706_v49, %v737_v29 }
 0x11d   : > { %v885_v32 = vmax.f32 %v853_v30, 0.0  ;;  %v838_v33 = vadd.f32 %v1711_v52, %v802_v31  ;;  %v687_v34 = vpop.f32.mrf.mxu2 }
 0x11e   : > { %v776_v35 = vpop.f32.mrf.mxu3 }
 0x11f   : > { %v917_v36 = vpack.c.bf16 %v885_v32, %v885_v32  ;;  %v870_v37 = vmax.f32 %v838_v33, 0.0  ;;  %v777_v38 = vadd.f32 %v776_v35, %v687_v34  ;;  %v649_v39 = vpop.f32.mrf.mxu0 }
 0x120   : > { %v738_v40 = vpop.f32.mrf.mxu1 }
 0x121   : > { %950 = vst.msk [vmem:[%s1718_s28 + $0x6c] sm:$0xf] %vm922_vm0, %v917_v36  ;;  %v902_v41 = vpack.c.bf16 %v870_v37, %v870_v37  ;;  %v818_v42 = vmul.f32 %v1706_v49, %v777_v38  ;;  %v739_v43 = vadd.f32 %v738_v40, %v649_v39 }
 0x123   : > { %935 = vst.msk [vmem:[%s1718_s28 + $0x30] sm:$0xf] %vm922_vm0, %v902_v41  ;;  %v854_v44 = vadd.f32 %v1711_v52, %v818_v42  ;;  %v803_v45 = vmul.f32 %v1706_v49, %v739_v43 }
 0x125   : > { %v886_v46 = vmax.f32 %v854_v44, 0.0  ;;  %v839_v47 = vadd.f32 %v1711_v52, %v803_v45  ;;  %v689_v48 = vpop.f32.mrf.mxu2 }
 0x126   : > { %v778_v50 = vpop.f32.mrf.mxu3 }
 0x127   : > { %v918_v51 = vpack.c.bf16 %v886_v46, %v886_v46  ;;  %v871_v53 = vmax.f32 %v839_v47, 0.0  ;;  %v779_v54 = vadd.f32 %v778_v50, %v689_v48  ;;  %v652_v55 = vpop.f32.mrf.mxu0 }
 0x128   : > { %v741_v56 = vpop.f32.mrf.mxu1 }
 0x129   : > { %951 = vst.msk [vmem:[%s1718_s28 + $0x70] sm:$0xf] %vm922_vm0, %v918_v51  ;;  %v903_v57 = vpack.c.bf16 %v871_v53, %v871_v53  ;;  %v819_v58 = vmul.f32 %v1706_v49, %v779_v54  ;;  %v742_v59 = vadd.f32 %v741_v56, %v652_v55 }
 0x12b   : > { %936 = vst.msk [vmem:[%s1718_s28 + $0x34] sm:$0xf] %vm922_vm0, %v903_v57  ;;  %v855_v60 = vadd.f32 %v1711_v52, %v819_v58  ;;  %v804_v61 = vmul.f32 %v1706_v49, %v742_v59 }
 0x12d   : > { %v887_v62 = vmax.f32 %v855_v60, 0.0  ;;  %v840_v63 = vadd.f32 %v1711_v52, %v804_v61  ;;  %v692_v0 = vpop.f32.mrf.mxu2 }
 0x12e   : > { %v781_v1 = vpop.f32.mrf.mxu3 }
 0x12f   : > { %v919_v2 = vpack.c.bf16 %v887_v62, %v887_v62  ;;  %v872_v3 = vmax.f32 %v840_v63, 0.0  ;;  %v782_v4 = vadd.f32 %v781_v1, %v692_v0  ;;  %v654_v5 = vpop.f32.mrf.mxu0 }
 0x130   : > { %v743_v6 = vpop.f32.mrf.mxu1 }
 0x131   : > { %952 = vst.msk [vmem:[%s1718_s28 + $0x74] sm:$0xf] %vm922_vm0, %v919_v2  ;;  %v904_v7 = vpack.c.bf16 %v872_v3, %v872_v3  ;;  %v820_v8 = vmul.f32 %v1706_v49, %v782_v4  ;;  %v744_v9 = vadd.f32 %v743_v6, %v654_v5 }
 0x133   : > { %937 = vst.msk [vmem:[%s1718_s28 + $0x38] sm:$0xf] %vm922_vm0, %v904_v7  ;;  %v856_v10 = vadd.f32 %v1711_v52, %v820_v8  ;;  %v805_v11 = vmul.f32 %v1706_v49, %v744_v9 }
 0x135   : > { %v888_v12 = vmax.f32 %v856_v10, 0.0  ;;  %v841_v13 = vadd.f32 %v1711_v52, %v805_v11  ;;  %v694_v14 = vpop.f32.mrf.mxu2 }
 0x136   : > { %v783_v15 = vpop.f32.mrf.mxu3 }
 0x137   : > { %v920_v16 = vpack.c.bf16 %v888_v12, %v888_v12  ;;  %v873_v17 = vmax.f32 %v841_v13, 0.0  ;;  %v784_v18 = vadd.f32 %v783_v15, %v694_v14 }
 0x139   : > { %953 = vst.msk [vmem:[%s1718_s28 + $0x78] sm:$0xf] %vm922_vm0, %v920_v16  ;;  %v905_v19 = vpack.c.bf16 %v873_v17, %v873_v17  ;;  %v821_v20 = vmul.f32 %v1706_v49, %v784_v18 }
 0x13b   : > { %938 = vst.msk [vmem:[%s1718_s28 + $0x3c] sm:$0xf] %vm922_vm0, %v905_v19  ;;  %v857_v21 = vadd.f32 %v1711_v52, %v821_v20 }
 0x13d   : > { %v889_v22 = vmax.f32 %v857_v21, 0.0 }
 0x13f   : > { %v921_v23 = vpack.c.bf16 %v889_v22, %v889_v22 }
 0x141   : > { %954 = vst.msk [vmem:[%s1718_s28 + $0x7c] sm:$0xf] %vm922_vm0, %v921_v23 }
 0x142 PF: > { %s17_s20 = sadd.s32 1, %s1494_s20   ;;  %s1871_s15 = smov %s1478_s16 }
 0x143   : > { %p14_p0 = scmp.ge.s32.totalorder %s17_s20, 4   ;;  %s1872_s16 = smov %s1482_s17 }
 0x144   : > { %s1873_s17 = smov %s1572_s27  ;;  %s1874_s18 = smov %s1490_s19 }
 0x145   : > { %s1875_s19 = smov %s1877_s22  ;;  %16 = sbr.rel (!%p14_p0) target bundleno = 4 (0x4), region = 85 }
 0x14a   :  { %983 = vsyncpa [#allocation3], 1 }
 0x14b   :  { %985 = vsyncpa [#allocation3 + $0x1], 1 }

</bundles_post_ra>
